<compile_context>
chip_gen: v7x
topology: tpu7x:2x2x1
jax: 0.10.0
libtpu: 0.0.40
codegen_flags: <defaults>
</compile_context>

<pallas_src>
import numpy as np
import jax
import jax.numpy as jnp
from jax import lax
from jax.experimental import pallas as pl
from jax.experimental.pallas import tpu as pltpu

KSIZE = 3  # 3x3 conv, stride 1, padding 1


# ---------------------------------------------------------------------------
# Pallas kernel: fused 3x3 conv (3 banded matmuls) + bias + ReLU, whole batch
# ---------------------------------------------------------------------------
def _conv_rows_kernel(xrow_ref, bmat_ref, bias_ref, o_ref):
    # xrow_ref : (N, H+2, (W+2)*Cin)     padded input rows, Cin interleaved on lanes
    # bmat_ref : (3, (W+2)*Cin, W*Cout)  banded weight matrix per row offset dh
    # bias_ref : (1, W*Cout)             bias pre-broadcast over W (lane-dense)
    # o_ref    : (N*H, W*Cout)           lane-dense output rows, batch folded into M
    N = xrow_ref.shape[0]
    H = xrow_ref.shape[1] - 2
    x = xrow_ref[...]                            # whole padded input (~10 KiB)
    acc = None
    for dh in range(KSIZE):
        # batch folded into M via sublane concat: (N*H, Kdim) per band
        lhs = jnp.concatenate([x[n, dh:dh + H, :] for n in range(N)], axis=0)
        part = jnp.dot(lhs, bmat_ref[dh],
                       preferred_element_type=jnp.float32,
                       precision=lax.Precision.HIGHEST)
        acc = part if acc is None else acc + part
    o_ref[...] = jnp.maximum(acc + bias_ref[...], 0.0).astype(o_ref.dtype)


# ---------------------------------------------------------------------------
# Wrapper: minimal layout plumbing + single pallas_call
# ---------------------------------------------------------------------------
@jax.jit
def _conv3x3_relu_pallas(x_nchw, bmat, bias_row):
    """Conv2d(Cin->Cout, k=3, stride=1, pad=1) + ReLU using precomputed
    banded weight matrices `bmat` and lane-dense bias row `bias_row`."""
    N, Cin, H, W = x_nchw.shape
    Nout = bias_row.shape[1]
    Cout = Nout // W
    Kdim = (W + 2) * Cin

    # single fused glue expression: NCHW -> padded channel-interleaved rows
    xrow = jnp.pad(jnp.transpose(x_nchw, (0, 2, 3, 1)),
                   ((0, 0), (1, 1), (1, 1), (0, 0))).reshape(N, H + 2, Kdim)

    cost = pl.CostEstimate(
        flops=2 * KSIZE * (N * H) * Kdim * Nout,
        transcendentals=0,
        bytes_accessed=4 * (xrow.size + bmat.size + bias_row.size + N * H * Nout),
    )

    out_rows = pl.pallas_call(
        _conv_rows_kernel,
        out_shape=jax.ShapeDtypeStruct((N * H, Nout), jnp.float32),
        grid_spec=pltpu.PrefetchScalarGridSpec(
            num_scalar_prefetch=0,
            grid=(1,),                                            # whole batch, one step
            in_specs=[
                pl.BlockSpec((N, H + 2, Kdim), lambda i: (0, 0, 0)),   # full input
                pl.BlockSpec((KSIZE, Kdim, Nout), lambda i: (0, 0, 0)),  # weights (once)
                pl.BlockSpec((1, Nout), lambda i: (0, 0)),               # bias row
            ],
            out_specs=pl.BlockSpec((N * H, Nout), lambda i: (0, 0)),
        ),
        compiler_params=pltpu.CompilerParams(
            dimension_semantics=("arbitrary",)),
        cost_estimate=cost,
    )(xrow, bmat, bias_row)

    # back to NCHW only to preserve Conv2d output semantics
    out = out_rows.reshape(N, H, W, Cout)
    return jnp.transpose(out, (0, 3, 1, 2))


# ---------------------------------------------------------------------------
# Init-time (weight-only) preprocessing — hoisted out of the forward path
# ---------------------------------------------------------------------------
def _banded_conv_weights(weight, bias, W):
    """bmat[dh, p*Cin+i, w*Cout+o] = weight[o, i, dh, p-w] for 0 <= p-w < 3."""
    Cout, Cin = weight.shape[0], weight.shape[1]
    w_np = np.asarray(weight)
    bmat = np.zeros((KSIZE, (W + 2) * Cin, W * Cout), np.float32)
    for dh in range(KSIZE):
        for dw in range(KSIZE):
            for w in range(W):
                p = w + dw  # padded input column feeding output column w
                bmat[dh, p * Cin:(p + 1) * Cin, w * Cout:(w + 1) * Cout] = \
                    w_np[:, :, dh, dw].T
    bias_row = np.tile(np.asarray(bias), W).reshape(1, W * Cout).astype(np.float32)
    return jnp.asarray(bmat), jnp.asarray(bias_row)


# ---------------------------------------------------------------------------
# DummyModule equivalent: pure delegation to the wrapped module
# ---------------------------------------------------------------------------
class DummyModule:
    def __init__(self, model):
        self.module = model

    def __call__(self, *xs, **kwargs):
        return self.module(*xs, **kwargs)


class InnerConvReluModel:
    """Synthetic inner model wrapped by DummyModule (Conv3x3 + ReLU)."""

    def __init__(self, cin, cout, width, key):
        kw, kb = jax.random.split(key)
        fan_in = cin * KSIZE * KSIZE
        scale = (2.0 / fan_in) ** 0.5
        self.weight = scale * jax.random.normal(
            kw, (cout, cin, KSIZE, KSIZE), dtype=jnp.float32)
        self.bias = 0.01 * jax.random.normal(kb, (cout,), dtype=jnp.float32)
        # precompute banded weight matrices + lane-dense bias once (not per call)
        self.bmat, self.bias_row = _banded_conv_weights(self.weight, self.bias, width)

    def __call__(self, x):
        return _conv3x3_relu_pallas(x, self.bmat, self.bias_row)


if __name__ == "__main__":
    key = jax.random.PRNGKey(0)
    k_x, k_m = jax.random.split(key)

    N, Cin, H, W = 2, 4, 16, 16
    Cout = 8
    x = jax.random.normal(k_x, (N, Cin, H, W), dtype=jnp.float32)

    inner = InnerConvReluModel(cin=Cin, cout=Cout, width=W, key=k_m)
    model = DummyModule(inner)          # forward(*xs) -> inner(*xs)

    out = jax.block_until_ready(model(x))

    # sanity checks: shape, ReLU non-negativity, numerical match vs XLA conv
    assert out.shape == (N, Cout, H, W)
    assert bool(jnp.all(out >= 0.0))

    ref = lax.conv_general_dilated(
        x, inner.weight, window_strides=(1, 1), padding=((1, 1), (1, 1)),
        dimension_numbers=("NCHW", "OIHW", "NCHW"),
        precision=lax.Precision.HIGHEST)
    ref = jnp.maximum(ref + inner.bias.reshape(1, Cout, 1, 1), 0.0)
    assert bool(jnp.allclose(out, ref, atol=5e-3, rtol=5e-3))

    print("KERNEL_OK")
</pallas_src>

<mosaic_0001>
module attributes {stable_mosaic.version = 11 : i64} {
  func.func @_conv_rows_kernel(%arg0: i32, %arg1: memref<2x18x72xf32, #tpu.memory_space<vmem>>, %arg2: memref<3x72x128xf32, #tpu.memory_space<vmem>>, %arg3: memref<1x128xf32, #tpu.memory_space<vmem>>, %arg4: memref<32x128xf32, #tpu.memory_space<vmem>>) attributes {dimension_semantics = [#tpu.dimension_semantics<arbitrary>], iteration_bounds = array<i64: 1>, scalar_prefetch = 0 : i64, scratch_operands = 0 : i64, tpu.core_type = #tpu.core_type<tc>, window_params = [{pipeline_mode = #tpu.pipeline_mode<synchronous>, transform_indices = @transform_0, window_bounds = array<i64: 2, 18, 72>}, {pipeline_mode = #tpu.pipeline_mode<synchronous>, transform_indices = @transform_1, window_bounds = array<i64: 3, 72, 128>}, {pipeline_mode = #tpu.pipeline_mode<synchronous>, transform_indices = @transform_2, window_bounds = array<i64: 1, 128>}, {pipeline_mode = #tpu.pipeline_mode<synchronous>, transform_indices = @transform_3, window_bounds = array<i64: 32, 128>}]} {
    %c0 = arith.constant 0 : index
    %c0_0 = arith.constant 0 : index
    %c0_1 = arith.constant 0 : index
    %0 = vector.load %arg1[%c0, %c0_0, %c0_1] : memref<2x18x72xf32, #tpu.memory_space<vmem>>, vector<2x18x72xf32>
    %1 = vector.extract_strided_slice %0 {offsets = [0, 0, 0], sizes = [1, 16, 72], strides = [1, 1, 1]} : vector<2x18x72xf32> to vector<1x16x72xf32>
    %2 = vector.shape_cast %1 : vector<1x16x72xf32> to vector<16x72xf32>
    %3 = vector.extract_strided_slice %0 {offsets = [1, 0, 0], sizes = [1, 16, 72], strides = [1, 1, 1]} : vector<2x18x72xf32> to vector<1x16x72xf32>
    %4 = vector.shape_cast %3 : vector<1x16x72xf32> to vector<16x72xf32>
    %5 = tpu.concatenate %2, %4 in 0 : vector<16x72xf32>, vector<16x72xf32> -> vector<32x72xf32>
    %c0_2 = arith.constant 0 : index
    %c0_3 = arith.constant 0 : index
    %c0_4 = arith.constant 0 : index
    %6 = vector.load %arg2[%c0_2, %c0_3, %c0_4] : memref<3x72x128xf32, #tpu.memory_space<vmem>>, vector<1x72x128xf32>
    %7 = vector.shape_cast %6 : vector<1x72x128xf32> to vector<72x128xf32>
    %cst = arith.constant dense<0.000000e+00> : vector<32x128xf32>
    %8 = tpu.matmul %5, %7, %cst {dimension_numbers = #tpu.dot_dimension_numbers<[1], [0], [0], [1], [0, 0, 1, 1], [], []>, precision = #tpu.contract_precision<fp32>} : vector<32x72xf32>, vector<72x128xf32>, vector<32x128xf32> -> vector<32x128xf32>
    %9 = vector.extract_strided_slice %0 {offsets = [0, 1, 0], sizes = [1, 16, 72], strides = [1, 1, 1]} : vector<2x18x72xf32> to vector<1x16x72xf32>
    %10 = vector.shape_cast %9 : vector<1x16x72xf32> to vector<16x72xf32>
    %11 = vector.extract_strided_slice %0 {offsets = [1, 1, 0], sizes = [1, 16, 72], strides = [1, 1, 1]} : vector<2x18x72xf32> to vector<1x16x72xf32>
    %12 = vector.shape_cast %11 : vector<1x16x72xf32> to vector<16x72xf32>
    %13 = tpu.concatenate %10, %12 in 0 : vector<16x72xf32>, vector<16x72xf32> -> vector<32x72xf32>
    %c1 = arith.constant 1 : index
    %c0_5 = arith.constant 0 : index
    %c0_6 = arith.constant 0 : index
    %14 = vector.load %arg2[%c1, %c0_5, %c0_6] : memref<3x72x128xf32, #tpu.memory_space<vmem>>, vector<1x72x128xf32>
    %15 = vector.shape_cast %14 : vector<1x72x128xf32> to vector<72x128xf32>
    %cst_7 = arith.constant dense<0.000000e+00> : vector<32x128xf32>
    %16 = tpu.matmul %13, %15, %cst_7 {dimension_numbers = #tpu.dot_dimension_numbers<[1], [0], [0], [1], [0, 0, 1, 1], [], []>, precision = #tpu.contract_precision<fp32>} : vector<32x72xf32>, vector<72x128xf32>, vector<32x128xf32> -> vector<32x128xf32>
    %17 = arith.addf %8, %16 : vector<32x128xf32>
    %18 = vector.extract_strided_slice %0 {offsets = [0, 2, 0], sizes = [1, 16, 72], strides = [1, 1, 1]} : vector<2x18x72xf32> to vector<1x16x72xf32>
    %19 = vector.shape_cast %18 : vector<1x16x72xf32> to vector<16x72xf32>
    %20 = vector.extract_strided_slice %0 {offsets = [1, 2, 0], sizes = [1, 16, 72], strides = [1, 1, 1]} : vector<2x18x72xf32> to vector<1x16x72xf32>
    %21 = vector.shape_cast %20 : vector<1x16x72xf32> to vector<16x72xf32>
    %22 = tpu.concatenate %19, %21 in 0 : vector<16x72xf32>, vector<16x72xf32> -> vector<32x72xf32>
    %c2 = arith.constant 2 : index
    %c0_8 = arith.constant 0 : index
    %c0_9 = arith.constant 0 : index
    %23 = vector.load %arg2[%c2, %c0_8, %c0_9] : memref<3x72x128xf32, #tpu.memory_space<vmem>>, vector<1x72x128xf32>
    %24 = vector.shape_cast %23 : vector<1x72x128xf32> to vector<72x128xf32>
    %cst_10 = arith.constant dense<0.000000e+00> : vector<32x128xf32>
    %25 = tpu.matmul %22, %24, %cst_10 {dimension_numbers = #tpu.dot_dimension_numbers<[1], [0], [0], [1], [0, 0, 1, 1], [], []>, precision = #tpu.contract_precision<fp32>} : vector<32x72xf32>, vector<72x128xf32>, vector<32x128xf32> -> vector<32x128xf32>
    %26 = arith.addf %17, %25 : vector<32x128xf32>
    %c0_11 = arith.constant 0 : index
    %c0_12 = arith.constant 0 : index
    %27 = vector.load %arg3[%c0_11, %c0_12] : memref<1x128xf32, #tpu.memory_space<vmem>>, vector<1x128xf32>
    %28 = vector.broadcast %27 : vector<1x128xf32> to vector<32x128xf32>
    %29 = arith.addf %26, %28 : vector<32x128xf32>
    %cst_13 = arith.constant 0.000000e+00 : f32
    %30 = vector.broadcast %cst_13 : f32 to vector<32x128xf32>
    %31 = arith.maximumf %29, %30 : vector<32x128xf32>
    %c0_14 = arith.constant 0 : index
    %c0_15 = arith.constant 0 : index
    %32 = vector.load %arg4[%c0_14, %c0_15] : memref<32x128xf32, #tpu.memory_space<vmem>>, vector<32x128xf32>
    tpu.vector_store %arg4[%c0_14, %c0_15], %31 {strides = array<i32>} : memref<32x128xf32, #tpu.memory_space<vmem>>, vector<32x128xf32>,
    return
  }
  func.func @transform_0(%arg0: i32) -> (i32, i32, i32) {
    %c0_i32 = arith.constant 0 : i32
    %c0_i32_0 = arith.constant 0 : i32
    %c0_i32_1 = arith.constant 0 : i32
    %c0_i32_2 = arith.constant 0 : i32
    return %c0_i32, %c0_i32_0, %c0_i32_1 : i32, i32, i32
  }
  func.func @transform_1(%arg0: i32) -> (i32, i32, i32) {
    %c0_i32 = arith.constant 0 : i32
    %c0_i32_0 = arith.constant 0 : i32
    %c0_i32_1 = arith.constant 0 : i32
    %c0_i32_2 = arith.constant 0 : i32
    return %c0_i32, %c0_i32_0, %c0_i32_1 : i32, i32, i32
  }
  func.func @transform_2(%arg0: i32) -> (i32, i32) {
    %c0_i32 = arith.constant 0 : i32
    %c0_i32_0 = arith.constant 0 : i32
    %c0_i32_1 = arith.constant 0 : i32
    return %c0_i32, %c0_i32_0 : i32, i32
  }
  func.func @transform_3(%arg0: i32) -> (i32, i32) {
    %c0_i32 = arith.constant 0 : i32
    %c0_i32_0 = arith.constant 0 : i32
    %c0_i32_1 = arith.constant 0 : i32
    return %c0_i32, %c0_i32_0 : i32, i32
  }
}

</mosaic_0001>

<bundles_post_ra>
// kernel: _conv3x3_relu_pallas.1
= control target key start
LH: loop header
LB: loop body
LE: loop exit
PB: predicated region body
PF: predicated region fallthrough
CT: control target
= control target key end

     0   :  { %vm32_vm0 = vcmask 1046528   ;;  %vm56_vm1 = vcmask 588800   ;;  %vm1431_vm2 = vcmask 1045504   ;;  %s4120_s1 = inlined_call_operand.vmem [shape: f32[3,72,128], index: 1, kind: input, shape index: {}]   ;;  %s4121_s0 = inlined_call_operand.vmem [shape: f32[2,18,72], index: 0, kind: input, shape index: {}]   ;;  %s4122_s2 = inlined_call_operand.vmem [shape: f32[1,128], index: 2, kind: input, shape index: {}]   ;;  %s4123_s3 = inlined_call_operand.vmem [shape: f32[32,128], index: 3, kind: output, shape index: {}]  }
   0x1   :  { %v2166_v0 = vld [vmem:[%s4120_s1 + $0x48] sm:$0xff]  ;;  %v2167_v1 = vld [vmem:[%s4120_s1 + $0x50] sm:$0xff]  ;;  %v20_v2 = vld [vmem:[%s4120_s1] sm:$0xff] }
   0x2   :  { %v66_v3 = vand.u32 4294901760, %v2166_v0  ;;  %v69_v4 = vand.u32 4294901760, %v2167_v1  ;;  %v21_v5 = vld [vmem:[%s4120_s1 + $0x8] sm:$0xff]  ;;  %v753_v6 = vand.u32 4294901760, %v20_v2  ;;  %v3242_v7 = vld [vmem:[%s4120_s1 + $0x58] sm:$0xff]  ;;  %v3247_v8 = vld [vmem:[%s4120_s1 + $0x60] sm:$0xff] }
   0x3   :  { %v756_v9 = vand.u32 4294901760, %v21_v5  ;;  %v72_v10 = vand.u32 4294901760, %v3242_v7  ;;  %v75_v11 = vand.u32 4294901760, %v3247_v8  ;;  %v3254_v12 = vld [vmem:[%s4120_s1 + $0x10] sm:$0xff]  ;;  %v3259_v13 = vld [vmem:[%s4120_s1 + $0x18] sm:$0xff]  ;;  %v3264_v14 = vld [vmem:[%s4120_s1 + $0x68] sm:$0xff] }
   0x4   :  { %v3266_v15 = vpack.c.bf16 %v69_v4, %v66_v3  ;;  %v759_v16 = vand.u32 4294901760, %v3254_v12  ;;  %v762_v17 = vand.u32 4294901760, %v3259_v13  ;;  %v3273_v18 = vld [vmem:[%s4120_s1 + $0x70] sm:$0xff]  ;;  %v78_v19 = vand.u32 4294901760, %v3264_v14  ;;  %v3279_v20 = vld [vmem:[%s4120_s1 + $0x20] sm:$0xff]  ;;  %v3284_v21 = vld [vmem:[%s4120_s1 + $0x28] sm:$0xff] }
   0x5   :  { %v3286_v22 = vpack.c.bf16 %v756_v9, %v753_v6  ;;  %v3292_v23 = vpack.c.bf16 %v75_v11, %v72_v10  ;;  %v81_v24 = vand.u32 4294901760, %v3273_v18  ;;  %v765_v25 = vand.u32 4294901760, %v3279_v20  ;;  %v3299_v26 = vld [vmem:[%s4120_s1 + $0x78] sm:$0xff]  ;;  %v3304_v27 = vld [vmem:[%s4120_s1 + $0x80] sm:$0xff]  ;;  %v3309_v28 = vld [vmem:[%s4120_s1 + $0x30] sm:$0xff] }
   0x6   :  { %2852 = vmatprep.subr.bf16.mxu1 %v3266_v15  ;;  %v3316_v29 = vpack.c.bf16 %v762_v17, %v759_v16  ;;  %v768_v30 = vand.u32 4294901760, %v3284_v21  ;;  %v84_v31 = vand.u32 4294901760, %v3299_v26  ;;  %v87_v32 = vand.u32 4294901760, %v3304_v27  ;;  %v3324_v33 = vld [vmem:[%s4120_s1 + $0x38] sm:$0xff]  ;;  %v3333_v36 = vld [vmem:[%s4121_s0] sm:$0xff]  ;;  %v3338_v37 = vld [vmem:[%s4121_s0 + $0x8] sm:$0xff] }
   0x7   :  { %4180 = vst [vmem:[#allocation2_spill] sm:$0xff] %v3286_v22  ;;  %2996 = vmatprep.subr.bf16.mxu0 %v3286_v22  ;;  %2854 = vmatpush3.bf16.msra.mxu1 %v3266_v15  ;;  %v771_v34 = vand.u32 4294901760, %v3309_v28  ;;  %v774_v35 = vand.u32 4294901760, %v3324_v33  ;;  %v3346_v38 = vpack.c.bf16 %v81_v24, %v78_v19  ;;  %v33_v41 = vrot.slane %v3333_v36, 1  ;;  %v3364_v42 = vld [vmem:[%s4121_s0 + $0x10] sm:$0x3] }
   0x8   :  { %4181 = vst [vmem:[#allocation3_spill] sm:$0xff] %v3316_v29  ;;  %2998 = vmatpush3.bf16.msra.mxu0 %v3286_v22  ;;  %2856 = vmatprep.subr.bf16.mxu1 %v3292_v23  ;;  %v3352_v39 = vpack.c.bf16 %v768_v30, %v765_v25  ;;  %v3358_v40 = vpack.c.bf16 %v87_v32, %v84_v31  ;;  %v34_v44 = vrot.slane %v3338_v37, 1  ;;  %v744_v47 = vsel %vm56_vm1, %v3333_v36, 0  ;;  %v3389_v51 = vld [vmem:[%s4120_s1 + $0x88] sm:$0xff]  ;;  %v3394_v52 = vld [vmem:[%s4120_s1 + $0x40] sm:$0xff] }
   0x9   :  { %3000 = vmatprep.subr.bf16.mxu0 %v3316_v29  ;;  %v3371_v43 = vpack.c.bf16 %v774_v35, %v771_v34  ;;  %v3374_v45 = vsub.f32 %v2166_v0, %v66_v3  ;;  %v3376_v46 = vsub.f32 %v2167_v1, %v69_v4  ;;  %v3380_v48 = vsub.f32 %v20_v2, %v753_v6 }
   0xa   :  { %4182 = vst [vmem:[#allocation4_spill] sm:$0xff] %v3352_v39  ;;  %v3382_v49 = vsub.f32 %v21_v5, %v756_v9  ;;  %v36_v50 = vrot.slane %v3364_v42, 1  ;;  %v35_v53 = vsel %vm32_vm0, %v33_v41, %v34_v44  ;;  %v3399_v56 = vand.u32 4294901760, %v744_v47 }
   0xb   :  { %4183 = vst [vmem:[#allocation5_spill] sm:$0xff] %v3371_v43  ;;  %2858 = vmatpush3.bf16.msra.mxu1 %v3292_v23  ;;  %v182_v54 = vand.u32 4294901760, %v3374_v45  ;;  %v4142_v55 = vand.u32 4294901760, %v3376_v46  ;;  %v57_v57 = vsel %vm56_vm1, %v35_v53, 0  ;;  %v4127_v58 = vand.u32 4294901760, %v3380_v48 }
   0xc   :  { %4184 = vst [vmem:[#allocation6_spill] sm:$0xff] %v3399_v56  ;;  %3002 = vmatpush3.bf16.msra.mxu0 %v3316_v29  ;;  %2860 = vmatprep.subr.bf16.mxu1 %v3346_v38  ;;  %v4126_v59 = vand.u32 4294901760, %v3382_v49  ;;  %v37_v60 = vsel %vm32_vm0, %v34_v44, %v36_v50  ;;  %v3408_v61 = vand.u32 4294901760, %v57_v57  ;;  %v3417_v0 = vsub.f32 %v744_v47, %v3399_v56 }
   0xd   :  { %3004 = vmatprep.subr.bf16.mxu0 %v3352_v39  ;;  %v183_v62 = vsub.f32 %v3374_v45, %v182_v54  ;;  %v190_v63 = vsub.f32 %v3376_v46, %v4142_v55  ;;  %v3420_v1 = vand.u32 4294901760, %v3389_v51  ;;  %v3423_v2 = vand.u32 4294901760, %v3394_v52 }
   0xe   :  { %4185 = vst [vmem:[#allocation7_spill] sm:$0xff] %v3417_v0  ;;  %v59_v3 = vsel %vm56_vm1, %v37_v60, 0  ;;  %v746_v4 = vsel %vm56_vm1, %v3338_v37, 0  ;;  %v3430_v5 = vsub.f32 %v57_v57, %v3408_v61  ;;  %v4124_v41 = vand.u32 4294901760, %v3417_v0 }
   0xf   :  { %4186 = vst [vmem:[#allocation8_spill] sm:$0xff] %v3423_v2  ;;  %2862 = vmatpush3.bf16.msra.mxu1 %v3346_v38  ;;  %v184_v6 = vand.u32 4294901760, %v183_v62  ;;  %v191_v9 = vand.u32 4294901760, %v190_v63  ;;  %v3435_v44 = vand.u32 4294901760, %v59_v3  ;;  %v3437_v47 = vand.u32 4294901760, %v746_v4 }
  0x10   :  { %3006 = vmatpush3.bf16.msra.mxu0 %v3352_v39  ;;  %2864 = vmatprep.subr.bf16.mxu1 %v3358_v40  ;;  %v3442_v50 = vsub.f32 %v3242_v7, %v72_v10  ;;  %v3447_v53 = vsub.f32 %v3247_v8, %v75_v11  ;;  %v4125_v57 = vand.u32 4294901760, %v3430_v5  ;;  %v3011_v62 = vpack.c.bf16 %v4126_v59, %v4127_v58 }
  0x11   :  { %4187 = vst [vmem:[#allocation9_spill] sm:$0xff] %v3437_v47  ;;  %3008 = vmatprep.subr.bf16.mxu0 %v3371_v43  ;;  %v2867_v60 = vpack.c.bf16 %v191_v9, %v184_v6  ;;  %2653 = vmatprep.mubr.f32.mxu0 %v4124_v41  ;;  %v3460_v7 = vsub.f32 %v3254_v12, %v759_v16 }
  0x12   :  { %v3463_v8 = vsub.f32 %v59_v3, %v3435_v44  ;;  %v3466_v10 = vsub.f32 %v746_v4, %v3437_v47  ;;  %v4128_v11 = vand.u32 4294901760, %v3442_v50  ;;  %v4129_v63 = vand.u32 4294901760, %v3447_v53 }
  0x13   :  { %2866 = vmatpush3.bf16.msra.mxu1 %v3358_v40  ;;  %v142_v6 = vsub.f32 %v3430_v5, %v4125_v57  ;;  %v4135_v9 = vand.u32 4294901760, %v3460_v7  ;;  %v3478_v12 = vsub.f32 %v3259_v13, %v762_v17  ;;  %v3483_v16 = vsub.f32 %v3264_v14, %v78_v19 }
  0x14   :  { %4188 = vst [vmem:[#allocation10_spill] sm:$0xff] %v3466_v10  ;;  %3010 = vmatpush3.bf16.msra.mxu0 %v3371_v43  ;;  %2435 = vmatprep.subr.mxu1 %v3420_v1  ;;  %v4130_v3 = vand.u32 4294901760, %v3463_v8  ;;  %v4131_v4 = vand.u32 4294901760, %v3466_v10  ;;  %v197_v41 = vsub.f32 %v3442_v50, %v4128_v11  ;;  %v204_v13 = vsub.f32 %v3447_v53, %v4129_v63 }
  0x15   :  { %2651 = vmatprep.subr.mxu0 %v3423_v2  ;;  %v143_v14 = vand.u32 4294901760, %v142_v6  ;;  %v4134_v17 = vand.u32 4294901760, %v3478_v12  ;;  %v4141_v19 = vand.u32 4294901760, %v3483_v16  ;;  %v3501_v57 = vsub.f32 %v3273_v18, %v81_v24 }
  0x16   :  { %v152_v59 = vsub.f32 %v3463_v8, %v4130_v3  ;;  %v198_v58 = vand.u32 4294901760, %v197_v41  ;;  %v205_v11 = vand.u32 4294901760, %v204_v13  ;;  %v3518_v24 = vsub.f32 %v3279_v20, %v765_v25  ;;  %v3529_v3 = vld [vmem:[%s4121_s0 + $0x18] sm:$0xff]  ;;  %v3534_v20 = vld [vmem:[%s4121_s0 + $0x20] sm:$0xff] }
  0x17   :  { %2436 = vmatpush3.msra.mxu1 %v3420_v1  ;;  %2437 = vmatprep.mubr.f32.mxu1 %v143_v14  ;;  %v3015_v6 = vpack.c.bf16 %v4134_v17, %v4135_v9  ;;  %v211_v63 = vsub.f32 %v3483_v16, %v4141_v19  ;;  %v4138_v18 = vand.u32 4294901760, %v3501_v57  ;;  %v3524_v14 = vsub.f32 %v3284_v21, %v768_v30 }
  0x18   :  { %2652 = vmatpush3.msra.mxu0 %v3423_v2  ;;  %2868 = vmatprep.subr.bf16.mxu1 %v2867_v60  ;;  %v153_v41 = vand.u32 4294901760, %v152_v59  ;;  %v2871_v13 = vpack.c.bf16 %v205_v11, %v198_v58  ;;  %v4133_v30 = vand.u32 4294901760, %v3518_v24  ;;  %v3545_v58 = vsub.f32 %v3299_v26, %v84_v31 }
  0x19   :  { %3012 = vmatprep.subr.bf16.mxu0 %v3011_v62  ;;  %2654 = vmatmul.mubr.f32.vlgmr.msra.gmra.mrb[0].mxu0 %v4131_v4  ;;  %v212_v25 = vand.u32 4294901760, %v211_v63  ;;  %v218_v21 = vsub.f32 %v3501_v57, %v4138_v18  ;;  %v4132_v59 = vand.u32 4294901760, %v3524_v14  ;;  %v3551_v11 = vsub.f32 %v3304_v27, %v87_v32 }
  0x1a   :  { %2438 = vmatmul.mubr.f32.vlgmr.msra.gmra.mrb[0].mxu1 %v153_v41  ;;  %3014 = vmatpush3.bf16.msra.mxu0 %v3011_v62  ;;  %v3556_v63 = vsub.f32 %v3309_v28, %v771_v34  ;;  %v3561_v4 = vsub.f32 %v3324_v33, %v774_v35  ;;  %v4136_v31 = vand.u32 4294901760, %v3545_v58  ;;  %v41_v62 = vrot.slane %v3529_v3, 1  ;;  %v3576_v35 = vld [vmem:[%s4121_s0 + $0x28] sm:$0x3] }
  0x1b   :  { %2870 = vmatpush3.bf16.msra.mxu1 %v2867_v60  ;;  %3016 = vmatprep.subr.bf16.mxu0 %v3015_v6  ;;  %v219_v26 = vand.u32 4294901760, %v218_v21  ;;  %v42_v27 = vrot.slane %v3534_v20, 1  ;;  %v3019_v28 = vpack.c.bf16 %v4132_v59, %v4133_v30  ;;  %v4137_v32 = vand.u32 4294901760, %v3551_v11 }
  0x1c   :  { %2872 = vmatprep.subr.bf16.mxu1 %v2871_v13  ;;  %v4140_v33 = vand.u32 4294901760, %v3556_v63  ;;  %v4139_v34 = vand.u32 4294901760, %v3561_v4  ;;  %v225_v41 = vsub.f32 %v3545_v58, %v4136_v31  ;;  %v748_v59 = vsel %vm56_vm1, %v3529_v3, 0 }
  0x1d   :  { %v2875_v60 = vpack.c.bf16 %v219_v26, %v212_v25  ;;  %v43_v21 = vsel %vm32_vm0, %v41_v62, %v42_v27  ;;  %v232_v30 = vsub.f32 %v3551_v11, %v4137_v32  ;;  %v3592_v26 = vand.u32 4294901760, %v748_v59 }
  0x1e   :  { %3018 = vmatpush3.bf16.msra.mxu0 %v3015_v6  ;;  %v3023_v17 = vpack.c.bf16 %v4139_v34, %v4140_v33  ;;  %v61_v25 = vsel %vm56_vm1, %v43_v21, 0  ;;  %v226_v62 = vand.u32 4294901760, %v225_v41  ;;  %v44_v6 = vrot.slane %v3576_v35, 1 }
  0x1f   :  { %4189 = vst [vmem:[#allocation11_spill] sm:$0xff] %v3592_v26  ;;  %2874 = vmatpush3.bf16.msra.mxu1 %v2871_v13  ;;  %3020 = vmatprep.subr.bf16.mxu0 %v3019_v28  ;;  %v3594_v9 = vand.u32 4294901760, %v61_v25  ;;  %v750_v31 = vsel %vm56_vm1, %v3534_v20, 0  ;;  %v233_v32 = vand.u32 4294901760, %v232_v30  ;;  %v3600_v18 = vsub.f32 %v748_v59, %v3592_v26 }
  0x20   :  { %2876 = vmatprep.subr.bf16.mxu1 %v2875_v60  ;;  %v3602_v34 = vand.u32 4294901760, %v750_v31  ;;  %v3606_v21 = vsub.f32 %v3389_v51, %v3420_v1  ;;  %v45_v41 = vsel %vm32_vm0, %v42_v27, %v44_v6  ;;  %v3614_v33 = vsub.f32 %v3394_v52, %v3423_v2 }
  0x21   :  { %4190 = vst [vmem:[#allocation12_spill] sm:$0xff] %v3600_v18  ;;  %v3609_v13 = vsub.f32 %v61_v25, %v3594_v9  ;;  %v2879_v30 = vpack.c.bf16 %v233_v32, %v226_v62  ;;  %v4143_v59 = vand.u32 4294901760, %v3600_v18  ;;  %v63_v19 = vsel %vm56_vm1, %v45_v41, 0 }
  0x22   :  { %4191 = vst [vmem:[#allocation13_spill] sm:$0xff] %v3614_v33  ;;  %3022 = vmatpush3.bf16.msra.mxu0 %v3019_v28  ;;  %v3619_v55 = vsub.f32 %v750_v31, %v3602_v34  ;;  %v3622_v25 = vand.u32 4294901760, %v63_v19  ;;  %v3625_v27 = vand.u32 4294901760, %v3606_v21  ;;  %v3631_v28 = vand.u32 4294901760, %v3614_v33 }
  0x23   :  { %2878 = vmatpush3.bf16.msra.mxu1 %v2875_v60  ;;  %3024 = vmatprep.subr.bf16.mxu0 %v3023_v17  ;;  %v4146_v51 = vand.u32 4294901760, %v3609_v13  ;;  %v1438_v18 = vrot.slane %v3534_v20, 2 }
  0x24   :  { %4192 = vst [vmem:[#allocation14_spill] sm:$0xff] %v3619_v55  ;;  %4193 = vst [vmem:[#allocation15_spill] sm:$0xff] %v3622_v25  ;;  %2880 = vmatprep.subr.bf16.mxu1 %v2879_v30  ;;  %2656 = vmatprep.mubr.f32.mxu0 %v4143_v59  ;;  %v4144_v52 = vand.u32 4294901760, %v3619_v55  ;;  %v3637_v32 = vsub.f32 %v63_v19, %v3622_v25  ;;  %v239_v60 = vsub.f32 %v3606_v21, %v3625_v27 }
  0x25   :  { %4194 = vst [vmem:[#allocation16_spill] sm:$0xff] %v3631_v28  ;;  %v162_v31 = vsub.f32 %v3609_v13, %v4146_v51  ;;  %v2883_v59 = vpack.c.bf16 %v3376_v46, %v3374_v45  ;;  %v4195_v19 = vand.u32 4294901760, %v3376_v46  ;;  %v4198_v46 = vand.u32 4294901760, %v3483_v16 }
  0x26   :  { %3026 = vmatpush3.bf16.msra.mxu0 %v3023_v17  ;;  %v4145_v6 = vand.u32 4294901760, %v3637_v32  ;;  %v240_v41 = vand.u32 4294901760, %v239_v60  ;;  %v1433_v60 = vrot.slane %v3338_v37, 2  ;;  %v2887_v37 = vpack.c.bf16 %v3447_v53, %v3442_v50 }
  0x27   :  { %2882 = vmatpush3.bf16.msra.mxu1 %v2879_v30  ;;  %v163_v62 = vand.u32 4294901760, %v162_v31  ;;  %2657 = vmatmul.mubr.f32.gmra.mrb[2].mxu0 %v4144_v52  ;;  %v3655_v30 = vpack.c.bf16 %v4195_v19, %v182_v54  ;;  %v1432_v31 = vrot.slane %v3333_v36, 2  ;;  %v4199_v54 = vand.u32 4294901760, %v3501_v57 }
  0x28   :  { %2675 = vmatprep.subr.mxu0 %v3631_v28  ;;  %2677 = vmatprep.mubr.f32.mxu0 %v3399_v56  ;;  %v172_v17 = vsub.f32 %v3637_v32, %v4145_v6  ;;  %v4197_v6 = vand.u32 4294901760, %v3447_v53  ;;  %v2177_v53 = vld [vmem:[%s4120_s1 + $0xa0] sm:$0xff]  ;;  %v4201_v19 = vand.u32 4294901760, %v3551_v11 }
  0x29   :  { %2440 = vmatprep.mubr.f32.mxu1 %v163_v62  ;;  %2459 = vmatprep.subr.mxu1 %v240_v41  ;;  %v4196_v62 = vand.u32 4294901760, %v3442_v50  ;;  %v1434_v36 = vsel %vm1431_vm2, %v1432_v31, %v1433_v60  ;;  %v2176_v50 = vld [vmem:[%s4120_s1 + $0x98] sm:$0xff]  ;;  %v1467_v33 = vand.u32 4294901760, %v2177_v53 }
  0x2a   :  { %2676 = vmatpush3.msra.mxu0 %v3631_v28  ;;  %v173_v52 = vand.u32 4294901760, %v172_v17  ;;  %v4200_v17 = vand.u32 4294901760, %v3545_v58  ;;  %v1464_v51 = vand.u32 4294901760, %v2176_v50 }
  0x2b   :  { %2460 = vmatpush3.msra.mxu1 %v240_v41  ;;  %3028 = vmatprep.subr.bf16.mxu0 %v3286_v22  ;;  %v3665_v45 = vpack.c.bf16 %v4197_v6, %v4196_v62  ;;  %v3679_v6 = vpack.c.bf16 %v4199_v54, %v4198_v46  ;;  %v1452_v41 = vsel %vm56_vm1, %v1434_v36, 0  ;;  %v1435_v62 = vrot.slane %v3364_v42, 2  ;;  %v2178_v46 = vld [vmem:[%s4120_s1 + $0xa8] sm:$0xff]  ;;  %v3711_v54 = vld [vmem:[%s4120_s1 + $0xb0] sm:$0xff]  ;;  %v3716_v42 = vld [vmem:[%s4120_s1 + $0xb8] sm:$0xff] }
  0x2c   :  { %2884 = vmatprep.subr.bf16.mxu1 %v2883_v59  ;;  %2678 = vmatmul.mubr.f32.vlgmr.msra.gmra.mrb[0].mxu0 %v3437_v47  ;;  %v3699_v31 = vpack.c.bf16 %v4201_v19, %v4200_v17  ;;  %v3718_v17 = vand.u32 4294901760, %v1452_v41  ;;  %v3731_v19 = vld [vmem:[%s4120_s1 + $0xc8] sm:$0xff]  ;;  %v1476_v55 = vand.u32 4294901760, %v3716_v42 }
  0x2d   :  { %2441 = vmatmul.mubr.f32.gmra.mrb[2].mxu1 %v173_v52  ;;  %3030 = vmatpush3.bf16.msra.mxu0 %v3286_v22  ;;  %v2175_v52 = vld [vmem:[%s4120_s1 + $0x90] sm:$0xff] }
  0x2e   :  { %2461 = vmatprep.mubr.f32.mxu1 %v3408_v61  ;;  %3032 = vmatprep.subr.bf16.mxu0 %v3316_v29  ;;  %v1461_v36 = vand.u32 4294901760, %v2175_v52 }
  0x2f   :  { %2680 = vmatprep.mubr.f32.mxu0 %v3592_v26 }
  0x30   :  { %2681 = vmatmul.mubr.f32.gmra.mrb[2].mxu0 %v3602_v34  ;;  %v3735_v28 = vsub.f32 %v2175_v52, %v1461_v36  ;;  %v3757_v10 = vpack.c.bf16 %v1464_v51, %v1461_v36 }
  0x31   :  { %2462 = vmatmul.mubr.f32.vlgmr.msra.gmra.mrb[0].mxu1 %v3435_v44  ;;  %3034 = vmatpush3.bf16.msra.mxu0 %v3316_v29  ;;  %v3751_v29 = vsub.f32 %v2177_v53, %v1467_v33 }
  0x32   :  { %2886 = vmatpush3.bf16.msra.mxu1 %v2883_v59  ;;  %3036 = vmatprep.subr.bf16.mxu0 %v3352_v39  ;;  %v2891_v59 = vpack.c.bf16 %v3501_v57, %v3483_v16  ;;  %v2895_v57 = vpack.c.bf16 %v3551_v11, %v3545_v58  ;;  %v3726_v16 = vld [vmem:[%s4120_s1 + $0xc0] sm:$0xff]  ;;  %v1437_v58 = vrot.slane %v3529_v3, 2  ;;  %v1470_v11 = vand.u32 4294901760, %v2178_v46 }
  0x33   :  { %2888 = vmatprep.subr.bf16.mxu1 %v2887_v37  ;;  %2464 = vmatprep.mubr.f32.mxu1 %v3594_v9  ;;  %v1436_v3 = vsel %vm1431_vm2, %v1433_v60, %v1435_v62  ;;  %v4165_v20 = vand.u32 4294901760, %v3735_v28  ;;  %v1440_v60 = vrot.slane %v3576_v35, 2  ;;  %v4202_v62 = vand.u32 4294901760, %v3726_v16 }
  0x34   :  { %2701 = vmatprep.mubr.f32.mxu0 %v3399_v56  ;;  %v1473_v56 = vand.u32 4294901760, %v3711_v54  ;;  %v1439_v22 = vsel %vm1431_vm2, %v1437_v58, %v1438_v18  ;;  %v3760_v52 = vsub.f32 %v2178_v46, %v1470_v11  ;;  %v4203_v58 = vand.u32 4294901760, %v3731_v19 }
  0x35   :  { %3038 = vmatpush3.bf16.msra.mxu0 %v3352_v39  ;;  %2465 = vmatmul.mubr.f32.gmra.mrb[2].mxu1 %v3622_v25  ;;  %v3746_v39 = vsub.f32 %v1452_v41, %v3718_v17  ;;  %v1454_v41 = vsel %vm56_vm1, %v1436_v3, 0  ;;  %v1456_v3 = vsel %vm56_vm1, %v1439_v22, 0  ;;  %v4204_v35 = vand.u32 4294901760, %v3380_v48 }
  0x36   :  { %2890 = vmatpush3.bf16.msra.mxu1 %v2887_v37  ;;  %3040 = vmatprep.subr.bf16.mxu0 %v3371_v43  ;;  %v3749_v37 = vsub.f32 %v2176_v50, %v1464_v51  ;;  %v3763_v50 = vpack.c.bf16 %v1470_v11, %v1467_v33  ;;  %v3765_v53 = vpack.c.bf16 %v1476_v55, %v1473_v56  ;;  %v4206_v46 = vand.u32 4294901760, %v3460_v7 }
  0x37   :  { %2892 = vmatprep.subr.bf16.mxu1 %v2891_v59  ;;  %2485 = vmatprep.mubr.f32.mxu1 %v3430_v5  ;;  %v870_v33 = vsub.f32 %v3380_v48, %v4204_v35  ;;  %v3784_v11 = vsub.f32 %v3735_v28, %v4165_v20  ;;  %v1441_v51 = vsel %vm1431_vm2, %v1438_v18, %v1440_v60  ;;  %v4207_v20 = vand.u32 4294901760, %v3478_v12 }
  0x38   :  { %v884_v22 = vsub.f32 %v3460_v7, %v4206_v46  ;;  %v3810_v18 = vsub.f32 %v3711_v54, %v1473_v56  ;;  %v4209_v60 = vand.u32 4294901760, %v3518_v24  ;;  %v4210_v35 = vand.u32 4294901760, %v3524_v14 }
  0x39   :  { %3042 = vmatpush3.bf16.msra.mxu0 %v3371_v43  ;;  %v891_v43 = vsub.f32 %v3478_v12, %v4207_v20  ;;  %v4211_v56 = vand.u32 4294901760, %v3556_v63  ;;  %v3830_v54 = vsub.f32 %v3716_v42, %v1476_v55  ;;  %v4213_v55 = vand.u32 4294901760, %v3749_v37 }
  0x3a   :  { %2894 = vmatpush3.bf16.msra.mxu1 %v2891_v59  ;;  %2699 = vmatprep.subr.mxu0 %v3423_v2  ;;  %v3771_v59 = vpack.c.bf16 %v4203_v58, %v4202_v62  ;;  %v3786_v62 = vand.u32 4294901760, %v1454_v41  ;;  %v4205_v58 = vand.u32 4294901760, %v3382_v49  ;;  %v885_v25 = vand.u32 4294901760, %v884_v22 }
  0x3b   :  { %2896 = vmatprep.subr.bf16.mxu1 %v2895_v57  ;;  %v892_v20 = vand.u32 4294901760, %v891_v43  ;;  %v1458_v22 = vsel %vm56_vm1, %v1441_v51, 0  ;;  %v912_v43 = vsub.f32 %v3556_v63, %v4211_v56  ;;  %v4212_v51 = vand.u32 4294901760, %v3561_v4 }
  0x3c   :  { %v877_v36 = vsub.f32 %v3382_v49, %v4205_v58  ;;  %v4208_v58 = vand.u32 4294901760, %v3746_v39  ;;  %v4214_v42 = vand.u32 4294901760, %v3751_v29 }
  0x3d   :  { %2700 = vmatpush3.msra.mxu0 %v3423_v2  ;;  %v871_v2 = vand.u32 4294901760, %v870_v33  ;;  %v898_v33 = vsub.f32 %v3518_v24, %v4209_v60  ;;  %v3832_v60 = vpack.c.bf16 %v892_v20, %v885_v25  ;;  %v1585_v25 = vsub.f32 %v3749_v37, %v4213_v55 }
  0x3e   :  { %2898 = vmatpush3.bf16.msra.mxu1 %v2895_v57  ;;  %3044 = vmatprep.subr.bf16.mxu0 %v3757_v10  ;;  %v1537_v46 = vsub.f32 %v3746_v39, %v4208_v58  ;;  %v3805_v57 = vand.u32 4294901760, %v1456_v3  ;;  %v878_v0 = vand.u32 4294901760, %v877_v36  ;;  %v905_v58 = vsub.f32 %v3524_v14, %v4210_v35 }
  0x3f   :  { %2483 = vmatprep.subr.mxu1 %v3606_v21  ;;  %2702 = vmatmul.mubr.f32.vlgmr.msra.gmra.mrb[0].mxu0 %v3437_v47  ;;  %v3820_v36 = vsub.f32 %v1454_v41, %v3786_v62  ;;  %v899_v35 = vand.u32 4294901760, %v898_v33  ;;  %v3850_v20 = vand.u32 4294901760, %v1458_v22  ;;  %v4215_v33 = vand.u32 4294901760, %v3760_v52 }
  0x40   :  { %3046 = vmatpush3.bf16.msra.mxu0 %v3757_v10  ;;  %2704 = vmatprep.mubr.f32.mxu0 %v3592_v26  ;;  %v3823_v26 = vpack.c.bf16 %v878_v0, %v871_v2  ;;  %v906_v47 = vand.u32 4294901760, %v905_v58  ;;  %v1538_v41 = vand.u32 4294901760, %v1537_v46  ;;  %v3837_v0 = vsub.f32 %v1456_v3, %v3805_v57 }
  0x41   :  { %3048 = vmatprep.subr.bf16.mxu0 %v3763_v50  ;;  %v913_v2 = vand.u32 4294901760, %v912_v43  ;;  %v1592_v46 = vsub.f32 %v3751_v29, %v4214_v42  ;;  %v1599_v58 = vsub.f32 %v3760_v52, %v4215_v33  ;;  %v3861_v43 = vpack.c.bf16 %v3382_v49, %v3380_v48 }
  0x42   :  { %2484 = vmatpush3.msra.mxu1 %v3606_v21  ;;  %v919_v21 = vsub.f32 %v3561_v4, %v4212_v51  ;;  %v3852_v3 = vpack.c.bf16 %v906_v47, %v899_v35  ;;  %v3865_v51 = vpack.c.bf16 %v3478_v12, %v3460_v7  ;;  %v2183_v47 = vld [vmem:[%s4120_s1 + $0xd0] sm:$0xff]  ;;  %v4176_v35 = vand.u32 4294901760, %v3820_v36 }
  0x43   :  { %2900 = vmatprep.subr.bf16.mxu1 %v3266_v15  ;;  %2486 = vmatmul.mubr.f32.vlgmr.msra.gmra.mrb[0].mxu1 %v3463_v8  ;;  %v3876_v48 = vpack.c.bf16 %v3524_v14, %v3518_v24  ;;  %v3880_v49 = vpack.c.bf16 %v3561_v4, %v3556_v63  ;;  %v4174_v7 = vand.u32 4294901760, %v3830_v54  ;;  %v4218_v12 = vand.u32 4294901760, %v3726_v16 }
  0x44   :  { %2902 = vmatpush3.bf16.msra.mxu1 %v3266_v15  ;;  %3050 = vmatpush3.bf16.msra.mxu0 %v3763_v50  ;;  %v920_v56 = vand.u32 4294901760, %v919_v21  ;;  %v4175_v21 = vand.u32 4294901760, %v3810_v18  ;;  %v4177_v42 = vand.u32 4294901760, %v3837_v0  ;;  %v4219_v4 = vand.u32 4294901760, %v3731_v19 }
  0x45   :  { %2904 = vmatprep.subr.bf16.mxu1 %v3292_v23  ;;  %3052 = vmatprep.subr.bf16.mxu0 %v3765_v53  ;;  %4216 = vst [vmem:[#allocation17_spill] sm:$0xff] %v3876_v48  ;;  %4217 = vst [vmem:[#allocation18_spill] sm:$0xff] %v3880_v49  ;;  %v3887_v55 = vsub.f32 %v3726_v16, %v4218_v12  ;;  %v3900_v14 = vsub.f32 %v1458_v22, %v3850_v20  ;;  %v3904_v63 = vand.u32 4294901760, %v2183_v47 }
  0x46   :  { %2488 = vmatprep.mubr.f32.mxu1 %v3609_v13  ;;  %2705 = vmatmul.mubr.f32.gmra.mrb[2].mxu0 %v3602_v34  ;;  %v3890_v33 = vpack.c.bf16 %v920_v56, %v913_v2  ;;  %v3897_v24 = vsub.f32 %v3731_v19, %v4219_v4  ;;  %v1579_v16 = vand.u32 4294901760, %v3784_v11  ;;  %v4220_v2 = vand.u32 4294901760, %v3430_v5 }
  0x47   :  { %2489 = vmatmul.mubr.f32.gmra.mrb[2].mxu1 %v3637_v32  ;;  %2725 = vmatprep.mubr.f32.mxu0 %v1538_v41  ;;  %v1586_v41 = vand.u32 4294901760, %v1585_v25  ;;  %v1547_v19 = vsub.f32 %v3820_v36, %v4176_v35  ;;  %v1593_v56 = vand.u32 4294901760, %v1592_v46  ;;  %v1600_v12 = vand.u32 4294901760, %v1599_v58 }
  0x48   :  { %2906 = vmatpush3.bf16.msra.mxu1 %v3292_v23  ;;  %3054 = vmatpush3.bf16.msra.mxu0 %v3765_v53  ;;  %v1606_v22 = vsub.f32 %v3810_v18, %v4175_v21  ;;  %v1613_v4 = vsub.f32 %v3830_v54, %v4174_v7  ;;  %v1619_v11 = vand.u32 4294901760, %v3887_v55  ;;  %v1557_v5 = vsub.f32 %v3837_v0, %v4177_v42 }
  0x49   :  { %2908 = vmatprep.subr.bf16.mxu1 %v3346_v38  ;;  %3056 = vmatprep.subr.bf16.mxu0 %v3771_v59  ;;  %v1626_v25 = vand.u32 4294901760, %v3897_v24  ;;  %v3059_v58 = vpack.c.bf16 %v1586_v41, %v1579_v16  ;;  %v3063_v7 = vpack.c.bf16 %v1600_v12, %v1593_v56  ;;  %v4221_v48 = vand.u32 4294901760, %v3900_v14 }
  0x4a   :  { %2509 = vmatprep.mubr.f32.mxu1 %v4220_v2  ;;  %v1548_v2 = vand.u32 4294901760, %v1547_v19  ;;  %v1607_v21 = vand.u32 4294901760, %v1606_v22  ;;  %v1614_v35 = vand.u32 4294901760, %v1613_v4  ;;  %v1620_v42 = vsub.f32 %v3887_v55, %v1619_v11 }
  0x4b   :  { %v1558_v49 = vand.u32 4294901760, %v1557_v5  ;;  %v1627_v46 = vsub.f32 %v3897_v24, %v1626_v25  ;;  %v1567_v16 = vsub.f32 %v3900_v14, %v4221_v48  ;;  %v3940_v41 = vsub.f32 %v2183_v47, %v3904_v63 }
  0x4c   :  { %2910 = vmatpush3.bf16.msra.mxu1 %v3346_v38  ;;  %3058 = vmatpush3.bf16.msra.mxu0 %v3771_v59  ;;  %v3067_v19 = vpack.c.bf16 %v1614_v35, %v1607_v21  ;;  %v1621_v56 = vand.u32 4294901760, %v1620_v42  ;;  %v4222_v47 = vand.u32 4294901760, %v3463_v8  ;;  %v4223_v48 = vand.u32 4294901760, %v3609_v13  ;;  %v4234_v42 = vld [vmem:[#allocation5_spill] sm:$0xff] }
  0x4d   :  { %2912 = vmatprep.subr.bf16.mxu1 %v3358_v40  ;;  %2723 = vmatprep.subr.mxu0 %v3904_v63  ;;  %v1628_v12 = vand.u32 4294901760, %v1627_v46  ;;  %v1568_v22 = vand.u32 4294901760, %v1567_v16  ;;  %v3945_v4 = vand.u32 4294901760, %v3940_v41  ;;  %v3075_v13 = vpack.c.bf16 %v3749_v37, %v3735_v28 }
  0x4e   :  { %v4236_v5 = vand.u32 4294901760, %v3749_v37 }
  0x4f   :  { %v3071_v35 = vpack.c.bf16 %v1628_v12, %v1621_v56  ;;  %v1634_v21 = vsub.f32 %v3940_v41, %v3945_v4 }
  0x50   :  { %2914 = vmatpush3.bf16.msra.mxu1 %v3358_v40  ;;  %2724 = vmatpush3.msra.mxu0 %v3904_v63 }
  0x51   :  { %2507 = vmatprep.subr.mxu1 %v3420_v1  ;;  %3060 = vmatprep.subr.bf16.mxu0 %v3059_v58  ;;  %v1635_v8 = vand.u32 4294901760, %v1634_v21  ;;  %v4247_v21 = vand.u32 4294901760, %v3830_v54 }
  0x52   :  { %2726 = vmatmul.mubr.f32.vlgmr.msra.gmra.mrb[0].mxu0 %v1548_v2 }
  0x53   :  { %3062 = vmatpush3.bf16.msra.mxu0 %v3059_v58  ;;  %2728 = vmatprep.mubr.f32.mxu0 %v1558_v49  ;;  %v4224_v49 = vand.u32 4294901760, %v3637_v32  ;;  %v3079_v32 = vpack.c.bf16 %v3760_v52, %v3751_v29  ;;  %v4237_v58 = vld [vmem:[#allocation12_spill] sm:$0xff] }
  0x54   :  { %2508 = vmatpush3.msra.mxu1 %v3420_v1  ;;  %3064 = vmatprep.subr.bf16.mxu0 %v3063_v7  ;;  %v4238_v2 = vand.u32 4294901760, %v4237_v58 }
  0x55   :  { %2916 = vmatprep.subr.bf16.mxu1 %v3655_v30  ;;  %2510 = vmatmul.mubr.f32.vlgmr.msra.gmra.mrb[0].mxu1 %v4222_v47 }
  0x56   :  { %2918 = vmatpush3.bf16.msra.mxu1 %v3655_v30  ;;  %2512 = vmatprep.mubr.f32.mxu1 %v4223_v48  ;;  %v3083_v30 = vpack.c.bf16 %v3830_v54, %v3810_v18  ;;  %v849_v16 = vsub.f32 %v4237_v58, %v4238_v2  ;;  %v4244_v48 = vand.u32 4294901760, %v3820_v36  ;;  %v4249_v54 = vld [vmem:[#allocation6_spill] sm:$0xff] }
  0x57   :  { %2920 = vmatprep.subr.bf16.mxu1 %v3665_v45  ;;  %3066 = vmatpush3.bf16.msra.mxu0 %v3063_v7 }
  0x58   :  { %3068 = vmatprep.subr.bf16.mxu0 %v3067_v19  ;;  %2729 = vmatmul.mubr.f32.gmra.mrb[2].mxu0 %v1568_v22  ;;  %v4241_v22 = vld [vmem:[#allocation8_spill] sm:$0xff] }
  0x59   :  { %2513 = vmatmul.mubr.f32.gmra.mrb[2].mxu1 %v4224_v49  ;;  %2749 = vmatprep.mubr.f32.mxu0 %v3718_v17 }
  0x5a   :  { %2922 = vmatpush3.bf16.msra.mxu1 %v3665_v45  ;;  %2533 = vmatprep.mubr.f32.mxu1 %v3408_v61  ;;  %v3087_v45 = vpack.c.bf16 %v3897_v24, %v3887_v55 }
  0x5b   :  { %2924 = vmatprep.subr.bf16.mxu1 %v3679_v6  ;;  %3070 = vmatpush3.bf16.msra.mxu0 %v3067_v19  ;;  %v4240_v19 = vand.u32 4294901760, %v3760_v52  ;;  %v4246_v52 = vand.u32 4294901760, %v3810_v18  ;;  %v4248_v18 = vand.u32 4294901760, %v3900_v14 }
  0x5c   :  { %3072 = vmatprep.subr.bf16.mxu0 %v3071_v35 }
  0x5d   :  { %v3115_v49 = vpack.c.bf16 %v4247_v21, %v4246_v52 }
  0x5e   :  { %2926 = vmatpush3.bf16.msra.mxu1 %v3679_v6  ;;  %v4229_v6 = vld [vmem:[#allocation3_spill] sm:$0xff] }
  0x5f   :  { %2928 = vmatprep.subr.bf16.mxu1 %v3699_v31  ;;  %3074 = vmatpush3.bf16.msra.mxu0 %v3071_v35  ;;  %v850_v35 = vand.u32 4294901760, %v849_v16 }
  0x60   :  { %2747 = vmatprep.subr.mxu0 %v1635_v8 }
  0x62   :  { %2930 = vmatpush3.bf16.msra.mxu1 %v3699_v31 }
  0x63   :  { %2531 = vmatprep.subr.mxu1 %v3625_v27  ;;  %2748 = vmatpush3.msra.mxu0 %v1635_v8 }
  0x64   :  { %3076 = vmatprep.subr.bf16.mxu0 %v3075_v13  ;;  %2750 = vmatmul.mubr.f32.vlgmr.msra.gmra.mrb[0].mxu0 %v3786_v62 }
  0x65   :  { %3078 = vmatpush3.bf16.msra.mxu0 %v3075_v13  ;;  %2752 = vmatprep.mubr.f32.mxu0 %v3805_v57 }
  0x66   :  { %2532 = vmatpush3.msra.mxu1 %v3625_v27  ;;  %3080 = vmatprep.subr.bf16.mxu0 %v3079_v32  ;;  %v4225_v27 = vld [vmem:[#allocation15_spill] sm:$0xff] }
  0x67   :  { %2932 = vmatprep.subr.bf16.mxu1 %v3266_v15  ;;  %2534 = vmatmul.mubr.f32.vlgmr.msra.gmra.mrb[0].mxu1 %v3435_v44 }
  0x68   :  { %2934 = vmatpush3.bf16.msra.mxu1 %v3266_v15  ;;  %2536 = vmatprep.mubr.f32.mxu1 %v3594_v9  ;;  %v4226_v15 = vld [vmem:[#allocation7_spill] sm:$0xff] }
  0x69   :  { %2936 = vmatprep.subr.bf16.mxu1 %v3292_v23  ;;  %3082 = vmatpush3.bf16.msra.mxu0 %v3079_v32 }
  0x6a   :  { %3084 = vmatprep.subr.bf16.mxu0 %v3083_v30  ;;  %2753 = vmatmul.mubr.f32.gmra.mrb[2].mxu0 %v3850_v20 }
  0x6b   :  { %2537 = vmatmul.mubr.f32.gmra.mrb[2].mxu1 %v4225_v27  ;;  %2773 = vmatprep.mubr.f32.mxu0 %v3746_v39 }
  0x6c   :  { %2938 = vmatpush3.bf16.msra.mxu1 %v3292_v23  ;;  %2557 = vmatprep.mubr.f32.mxu1 %v3408_v61  ;;  %v4227_v23 = vand.u32 4294901760, %v4226_v15 }
  0x6d   :  { %2940 = vmatprep.subr.bf16.mxu1 %v3346_v38  ;;  %3086 = vmatpush3.bf16.msra.mxu0 %v3083_v30 }
  0x6e   :  { %3088 = vmatprep.subr.bf16.mxu0 %v3087_v45  ;;  %v829_v61 = vsub.f32 %v4226_v15, %v4227_v23 }
  0x70   :  { %2942 = vmatpush3.bf16.msra.mxu1 %v3346_v38  ;;  %v4228_v38 = vld [vmem:[#allocation2_spill] sm:$0xff] }
  0x71   :  { %2944 = vmatprep.subr.bf16.mxu1 %v3358_v40  ;;  %3090 = vmatpush3.bf16.msra.mxu0 %v3087_v45 }
  0x72   :  { %2771 = vmatprep.subr.mxu0 %v3940_v41 }
  0x74   :  { %2946 = vmatpush3.bf16.msra.mxu1 %v3358_v40  ;;  %v830_v40 = vand.u32 4294901760, %v829_v61 }
  0x75   :  { %2555 = vmatprep.subr.mxu1 %v3420_v1  ;;  %2772 = vmatpush3.msra.mxu0 %v3940_v41  ;;  %v4239_v41 = vand.u32 4294901760, %v3751_v29  ;;  %v4245_v29 = vand.u32 4294901760, %v3837_v0 }
  0x76   :  { %3092 = vmatprep.subr.bf16.mxu0 %v3757_v10  ;;  %2774 = vmatmul.mubr.f32.vlgmr.msra.gmra.mrb[0].mxu0 %v3820_v36  ;;  %v3119_v36 = vpack.c.bf16 %v1626_v25, %v1619_v11 }
  0x77   :  { %3094 = vmatpush3.bf16.msra.mxu0 %v3757_v10  ;;  %2776 = vmatprep.mubr.f32.mxu0 %v3837_v0  ;;  %v3111_v56 = vpack.c.bf16 %v4240_v19, %v4239_v41  ;;  %v4251_v0 = vld [vmem:[#allocation13_spill] sm:$0xff] }
  0x78   :  { %2556 = vmatpush3.msra.mxu1 %v3420_v1  ;;  %3096 = vmatprep.subr.bf16.mxu0 %v3763_v50  ;;  %v4230_v1 = vand.u32 4294901760, %v3746_v39  ;;  %v4235_v39 = vand.u32 4294901760, %v3735_v28  ;;  %v4242_v28 = vld [vmem:[#allocation14_spill] sm:$0xff] }
  0x79   :  { %2948 = vmatprep.subr.bf16.mxu1 %v4228_v38  ;;  %2558 = vmatmul.mubr.f32.vlgmr.msra.gmra.mrb[0].mxu1 %v3435_v44  ;;  %v4231_v44 = vld [vmem:[#allocation4_spill] sm:$0xff]  ;;  %v4243_v47 = vand.u32 4294901760, %v4242_v28 }
  0x7a   :  { %2950 = vmatpush3.bf16.msra.mxu1 %v4228_v38  ;;  %2560 = vmatprep.mubr.f32.mxu1 %v3594_v9  ;;  %v4232_v9 = vld [vmem:[#allocation10_spill] sm:$0xff]  ;;  %v3107_v46 = vpack.c.bf16 %v4236_v5, %v4235_v39 }
  0x7b   :  { %2952 = vmatprep.subr.bf16.mxu1 %v4229_v6  ;;  %3098 = vmatpush3.bf16.msra.mxu0 %v3763_v50  ;;  %v4233_v31 = vand.u32 4294901760, %v4232_v9  ;;  %v859_v37 = vsub.f32 %v4242_v28, %v4243_v47 }
  0x7c   :  { %3100 = vmatprep.subr.bf16.mxu0 %v3765_v53  ;;  %2777 = vmatmul.mubr.f32.gmra.mrb[2].mxu0 %v3900_v14 }
  0x7d   :  { %2561 = vmatmul.mubr.f32.gmra.mrb[2].mxu1 %v4225_v27  ;;  %2797 = vmatprep.mubr.f32.mxu0 %v4230_v1  ;;  %v839_v7 = vsub.f32 %v4232_v9, %v4233_v31  ;;  %v860_v8 = vand.u32 4294901760, %v859_v37 }
  0x7e   :  { %2954 = vmatpush3.bf16.msra.mxu1 %v4229_v6  ;;  %2581 = vmatprep.mubr.f32.mxu1 %v830_v40 }
  0x7f   :  { %2956 = vmatprep.subr.bf16.mxu1 %v4231_v44  ;;  %3102 = vmatpush3.bf16.msra.mxu0 %v3765_v53  ;;  %v840_v12 = vand.u32 4294901760, %v839_v7 }
  0x80   :  { %3104 = vmatprep.subr.bf16.mxu0 %v3771_v59 }
  0x82   :  { %2958 = vmatpush3.bf16.msra.mxu1 %v4231_v44 }
  0x83   :  { %2960 = vmatprep.subr.bf16.mxu1 %v4234_v42  ;;  %3106 = vmatpush3.bf16.msra.mxu0 %v3771_v59 }
  0x84   :  { %2795 = vmatprep.subr.mxu0 %v3904_v63 }
  0x86   :  { %2962 = vmatpush3.bf16.msra.mxu1 %v4234_v42 }
  0x87   :  { %2579 = vmatprep.subr.mxu1 %v4241_v22  ;;  %2796 = vmatpush3.msra.mxu0 %v3904_v63 }
  0x88   :  { %3108 = vmatprep.subr.bf16.mxu0 %v3107_v46  ;;  %2798 = vmatmul.mubr.f32.vlgmr.msra.gmra.mrb[0].mxu0 %v4244_v48 }
  0x89   :  { %3110 = vmatpush3.bf16.msra.mxu0 %v3107_v46  ;;  %2800 = vmatprep.mubr.f32.mxu0 %v4245_v29 }
  0x8a   :  { %2580 = vmatpush3.msra.mxu1 %v4241_v22  ;;  %3112 = vmatprep.subr.bf16.mxu0 %v3111_v56 }
  0x8b   :  { %2964 = vmatprep.subr.bf16.mxu1 %v3823_v26  ;;  %2582 = vmatmul.mubr.f32.vlgmr.msra.gmra.mrb[0].mxu1 %v840_v12 }
  0x8c   :  { %2966 = vmatpush3.bf16.msra.mxu1 %v3823_v26  ;;  %2584 = vmatprep.mubr.f32.mxu1 %v850_v35  ;;  %v4250_v26 = vld [vmem:[#allocation16_spill] sm:$0xff] }
  0x8d   :  { %2968 = vmatprep.subr.bf16.mxu1 %v3832_v60  ;;  %3114 = vmatpush3.bf16.msra.mxu0 %v3111_v56  ;;  %v926_v13 = vsub.f32 %v4251_v0, %v4250_v26 }
  0x8e   :  { %3116 = vmatprep.subr.bf16.mxu0 %v3115_v49  ;;  %2801 = vmatmul.mubr.f32.gmra.mrb[2].mxu0 %v4248_v18 }
  0x8f   :  { %2585 = vmatmul.mubr.f32.gmra.mrb[2].mxu1 %v860_v8  ;;  %2821 = vmatprep.mubr.f32.mxu0 %v3718_v17  ;;  %v927_v55 = vand.u32 4294901760, %v926_v13 }
  0x90   :  { %2970 = vmatpush3.bf16.msra.mxu1 %v3832_v60  ;;  %2605 = vmatprep.mubr.f32.mxu1 %v4249_v54  ;;  %v4252_v60 = vld [vmem:[#allocation9_spill] sm:$0xff] }
  0x91   :  { %2972 = vmatprep.subr.bf16.mxu1 %v3852_v3  ;;  %3118 = vmatpush3.bf16.msra.mxu0 %v3115_v49 }
  0x92   :  { %3120 = vmatprep.subr.bf16.mxu0 %v3119_v36 }
  0x94   :  { %2974 = vmatpush3.bf16.msra.mxu1 %v3852_v3  ;;  %v4253_v3 = vld [vmem:[#allocation11_spill] sm:$0xff] }
  0x95   :  { %2976 = vmatprep.subr.bf16.mxu1 %v3890_v33  ;;  %3122 = vmatpush3.bf16.msra.mxu0 %v3119_v36 }
  0x96   :  { %2819 = vmatprep.subr.mxu0 %v3945_v4 }
  0x98   :  { %2978 = vmatpush3.bf16.msra.mxu1 %v3890_v33 }
  0x99   :  { %2603 = vmatprep.subr.mxu1 %v927_v55  ;;  %2820 = vmatpush3.msra.mxu0 %v3945_v4 }
  0x9a   :  { %3124 = vmatprep.subr.bf16.mxu0 %v3757_v10  ;;  %2822 = vmatmul.mubr.f32.vlgmr.msra.gmra.mrb[0].mxu0 %v3786_v62 }
  0x9b   :  { %3126 = vmatpush3.bf16.msra.mxu0 %v3757_v10  ;;  %2824 = vmatprep.mubr.f32.mxu0 %v3805_v57  ;;  %v4254_v10 = vld [vmem:[#allocation17_spill] sm:$0xff] }
  0x9c   :  { %2604 = vmatpush3.msra.mxu1 %v927_v55  ;;  %3128 = vmatprep.subr.bf16.mxu0 %v3763_v50 }
  0x9d   :  { %2980 = vmatprep.subr.bf16.mxu1 %v3861_v43  ;;  %2606 = vmatmul.mubr.f32.vlgmr.msra.gmra.mrb[0].mxu1 %v4252_v60 }
  0x9e   :  { %2982 = vmatpush3.bf16.msra.mxu1 %v3861_v43  ;;  %2608 = vmatprep.mubr.f32.mxu1 %v4253_v3 }
  0x9f   :  { %2984 = vmatprep.subr.bf16.mxu1 %v3865_v51  ;;  %3130 = vmatpush3.bf16.msra.mxu0 %v3763_v50  ;;  %v4255_v50 = vld [vmem:[#allocation18_spill] sm:$0xff] }
  0xa0   :  { %3132 = vmatprep.subr.bf16.mxu0 %v3765_v53  ;;  %2825 = vmatmul.mubr.f32.gmra.mrb[2].mxu0 %v3850_v20 }
  0xa1   :  { %2609 = vmatmul.mubr.f32.gmra.mrb[2].mxu1 %v3602_v34  ;;  %2845 = vmatprep.mubr.f32.mxu0 %v3718_v17 }
  0xa2   :  { %2986 = vmatpush3.bf16.msra.mxu1 %v3865_v51  ;;  %2629 = vmatprep.mubr.f32.mxu1 %v4226_v15 }
  0xa3   :  { %2988 = vmatprep.subr.bf16.mxu1 %v4254_v10  ;;  %3134 = vmatpush3.bf16.msra.mxu0 %v3765_v53 }
  0xa4   :  { %3136 = vmatprep.subr.bf16.mxu0 %v3771_v59 }
  0xa6   :  { %2990 = vmatpush3.bf16.msra.mxu1 %v4254_v10 }
  0xa7   :  { %2992 = vmatprep.subr.bf16.mxu1 %v4255_v50  ;;  %3138 = vmatpush3.bf16.msra.mxu0 %v3771_v59  ;;  %v2184_v59 = vld [vmem:[%s4122_s2] ss:$0 sm:$0xff] }
  0xa8   :  { %2843 = vmatprep.subr.mxu0 %v3904_v63 }
  0xaa   :  { %2994 = vmatpush3.bf16.msra.mxu1 %v4255_v50 }
  0xab   :  { %2627 = vmatprep.subr.mxu1 %v4251_v0  ;;  %2844 = vmatpush3.msra.mxu0 %v3904_v63 }
  0xac   :  { %2846 = vmatmul.mubr.f32.vlgmr.msra.gmra.mrb[0].mxu0 %v3786_v62 }
  0xad   :  { %2848 = vmatprep.mubr.f32.mxu0 %v3805_v57 }
  0xae   :  { %2628 = vmatpush3.msra.mxu1 %v4251_v0 }
  0xaf   :  { %2630 = vmatmul.mubr.f32.vlgmr.msra.gmra.mrb[0].mxu1 %v4232_v9 }
  0xb0   :  { %2632 = vmatprep.mubr.f32.mxu1 %v4237_v58  ;;  %2849 = vmatmul.mubr.f32.gmra.mrb[2].mxu0 %v3850_v20 }
  0xb3   :  { %2633 = vmatmul.mubr.f32.gmra.mrb[2].mxu1 %v4242_v28 }
 0x17f   :  { %v2847_v34 = vpop.f32.mrb[0].mxu0 }
 0x180   :  { %v2117_v17 = vpop.f32.mrb[1].mxu0 }
 0x182   :  { %v2631_v53 = vpop.f32.mrb[0].mxu1 }
 0x183   :  { %v3139_v62 = vadd.f32 %v2847_v34, %v2631_v53  ;;  %v1086_v43 = vpop.f32.mrb[1].mxu1  ;;  %v2850_v57 = vpop.f32.mrb[2].mxu0 }
 0x184   :  { %v3140_v51 = vadd.f32 %v2117_v17, %v1086_v43  ;;  %v2129_v33 = vpop.f32.mrb[3].mxu0 }
 0x185   :  { %v2151_v24 = vadd.f32 %v3139_v62, %v2184_v59 }
 0x186   :  { %v2150_v14 = vadd.f32 %v3140_v51, %v2184_v59  ;;  %v2634_v63 = vpop.f32.mrb[2].mxu1 }
 0x187   :  { %v2155_v11 = vmax.f32 %v2151_v24, 0.0  ;;  %v3141_v25 = vadd.f32 %v2850_v57, %v2634_v63  ;;  %v1100_v20 = vpop.f32.mrb[3].mxu1 }
 0x188   :  { %v2154_v4 = vmax.f32 %v2150_v14, 0.0  ;;  %v3142_v32 = vadd.f32 %v2129_v33, %v1100_v20 }
 0x189   :  { %2159 = vst [vmem:[%s4123_s3 + $0x8] sm:$0xff] %v2155_v11  ;;  %v2153_v30 = vadd.f32 %v3141_v25, %v2184_v59 }
 0x18a   :  { %2158 = vst [vmem:[%s4123_s3] sm:$0xff] %v2154_v4  ;;  %v2152_v45 = vadd.f32 %v3142_v32, %v2184_v59 }
 0x18b   :  { %v2157_v27 = vmax.f32 %v2153_v30, 0.0 }
 0x18c   :  { %v2156_v15 = vmax.f32 %v2152_v45, 0.0 }
 0x18d   :  { %2161 = vst [vmem:[%s4123_s3 + $0x18] sm:$0xff] %v2157_v27 }
 0x18e   :  { %2160 = vst [vmem:[%s4123_s3 + $0x10] sm:$0xff] %v2156_v15 }

</bundles_post_ra>
